<compile_context>
chip_gen: v7x
topology: tpu7x:2x2x1
jax: 0.10.0
libtpu: 0.0.40
codegen_flags: <defaults>
</compile_context>

<pallas_src>
import functools

import jax
import jax.numpy as jnp
from jax.experimental import pallas as pl
from jax.experimental.pallas import tpu as pltpu

GAMMA = 1.5
ALPHA = 0.25
LANES = 128
ACC_ROWS = 32            # per-core accumulator slab: (32, 128) f32 = 16 KiB
MAX_TILE_ROWS = 4096     # 4096*128*4B = 2 MiB per input block
VMEM_LIMIT_BYTES = 32 * 1024 * 1024   # covers 2 inputs x 2 bufs x 2 MiB with headroom
PALLAS_MIN_ELEMS = 64 * 1024          # below this, plain XLA fusion wins


def _round_up(x, m):
    return (x + m - 1) // m * m


def _num_tensorcores() -> int:
    """2 on v7x (two TensorCores per chip), 1 on v5e/v6e. Conservative fallback: 1."""
    try:
        kind = jax.devices()[0].device_kind.lower()
    except Exception:
        return 1
    return 2 if ("v7" in kind or "7x" in kind) else 1


def _qfocal_kernel(pred_ref, true_ref, out_ref, *, gamma, alpha):
    # Grid: (core_partition [parallel], reduction tile [arbitrary]).
    @pl.when(pl.program_id(1) == 0)
    def _():
        out_ref[...] = jnp.zeros_like(out_ref)

    x = pred_ref[...].astype(jnp.float32)
    t = true_ref[...].astype(jnp.float32)

    # sigmoid via a single EUP tanh; exact for all practically relevant |x|.
    p = 0.5 * jnp.tanh(0.5 * x) + 0.5

    # Numerically-stable BCE-with-logits (matches torch.nn.BCEWithLogitsLoss):
    #   max(x, 0) - x*t + log1p(exp(-|x|)),  and  log1p(exp(-|x|)) == -log(max(p, 1-p)).
    bce = jnp.maximum(x, 0.0) - x * t - jnp.log(jnp.maximum(p, 1.0 - p))

    # alpha_factor = t*alpha + (1-t)*(1-alpha)  ->  single FMA with folded constants.
    alpha_factor = (2.0 * alpha - 1.0) * t + (1.0 - alpha)

    z = jnp.abs(t - p)
    if gamma == 1.5:
        modulating_factor = z * jnp.sqrt(z)    # z**1.5 without pow (exp+log)
    elif gamma == 2.0:
        modulating_factor = z * z
    elif gamma == 1.0:
        modulating_factor = z
    else:
        modulating_factor = z ** gamma

    loss = bce * (alpha_factor * modulating_factor)

    # Vector accumulation into the resident lane-dense (ACC_ROWS,128) output block:
    # ACC_ROWS/8 = 4 independent add chains per lane -> ILP for the VALU.
    tile_rows = loss.shape[0]
    acc_rows = out_ref.shape[0]
    out_ref[...] += loss.reshape(tile_rows // acc_rows, acc_rows, LANES).sum(axis=0)


def qfocal_loss_ref(pred, true, *, gamma=GAMMA, alpha=ALPHA, reduction="mean"):
    """Pure-jnp reference (and small-input fast path)."""
    x = pred.astype(jnp.float32)
    t = true.astype(jnp.float32)
    bce = jnp.maximum(x, 0.0) - x * t + jnp.log1p(jnp.exp(-jnp.abs(x)))
    p = jax.nn.sigmoid(x)
    af = t * alpha + (1.0 - t) * (1.0 - alpha)
    mf = jnp.abs(t - p) ** gamma
    loss = bce * af * mf
    if reduction == "mean":
        return jnp.mean(loss)
    elif reduction == "sum":
        return jnp.sum(loss)
    return loss


def qfocal_loss(pred, true, *, gamma=GAMMA, alpha=ALPHA, reduction="mean",
                pallas_min_elems=PALLAS_MIN_ELEMS):
    """QFocalLoss forward. pred/true: same shape (e.g. NCHW logits / soft targets)."""
    assert pred.shape == true.shape
    if reduction not in ("mean", "sum"):
        # TODO(synk): reduction='none' needs an elementwise-output kernel variant.
        raise NotImplementedError("qfocal_loss supports reduction in {'mean','sum'}")

    total_n = int(pred.size)
    if total_n < pallas_min_elems:
        # Tiny inputs: the fixed pallas_call + padding cost dominates; XLA fusion wins.
        return qfocal_loss_ref(pred, true, gamma=gamma, alpha=alpha, reduction=reduction)

    # Padding trick: pred padded with 0.0, true padded with 0.5 -> sigmoid(0)=0.5
    # makes the modulating factor exactly 0, so padded elements contribute nothing.
    if not jnp.issubdtype(true.dtype, jnp.floating):
        true = true.astype(jnp.float32)
    if not jnp.issubdtype(pred.dtype, jnp.floating):
        pred = pred.astype(jnp.float32)

    num_cores = _num_tensorcores()
    rows = pl.cdiv(total_n, LANES)
    tiles_per_core = pl.cdiv(rows, num_cores * MAX_TILE_ROWS)
    tile_rows = _round_up(pl.cdiv(rows, num_cores * tiles_per_core), ACC_ROWS)
    rows_padded = num_cores * tiles_per_core * tile_rows
    padded_total = rows_padded * LANES

    pred_flat = pred.reshape(-1)
    true_flat = true.reshape(-1)
    pad = padded_total - total_n
    if pad:
        pred_flat = jnp.pad(pred_flat, (0, pad), constant_values=0.0)
        true_flat = jnp.pad(true_flat, (0, pad), constant_values=0.5)
    pred2d = pred_flat.reshape(rows_padded, LANES)
    true2d = true_flat.reshape(rows_padded, LANES)

    kernel = functools.partial(_qfocal_kernel, gamma=gamma, alpha=alpha)
    in_map = lambda c, i: (c * tiles_per_core + i, 0)

    partials = pl.pallas_call(
        kernel,
        out_shape=jax.ShapeDtypeStruct((num_cores * ACC_ROWS, LANES), jnp.float32),
        grid_spec=pltpu.PrefetchScalarGridSpec(
            num_scalar_prefetch=0,
            grid=(num_cores, tiles_per_core),
            in_specs=[
                pl.BlockSpec((tile_rows, LANES), in_map),
                pl.BlockSpec((tile_rows, LANES), in_map),
            ],
            # One lane-dense (ACC_ROWS, 128) accumulator slab per core partition.
            out_specs=pl.BlockSpec((ACC_ROWS, LANES), lambda c, i: (c, 0)),
        ),
        compiler_params=pltpu.CompilerParams(
            dimension_semantics=("parallel", "arbitrary"),
            vmem_limit_bytes=VMEM_LIMIT_BYTES,
        ),
    )(pred2d, true2d)

    total = jnp.sum(partials)
    if reduction == "mean":
        total = total / jnp.float32(total_n)
    return total


if __name__ == "__main__":
    key = jax.random.PRNGKey(0)
    k1, k2 = jax.random.split(key)

    # Small NCHW logits / soft (IoU-style) targets.
    B, C, H, W = 2, 4, 16, 16  # 2048 elements
    pred = jax.random.normal(k1, (B, C, H, W), dtype=jnp.float32)
    true = jax.random.uniform(k2, (B, C, H, W), dtype=jnp.float32)

    # Force the Pallas path even at this small size (pallas_min_elems=0).
    out = jax.block_until_ready(qfocal_loss(pred, true, pallas_min_elems=0))
    ref = qfocal_loss_ref(pred, true)
    assert jnp.allclose(out, ref, rtol=1e-4, atol=1e-6), (out, ref)

    # 'sum' reduction through the Pallas path.
    out_s = jax.block_until_ready(
        qfocal_loss(pred, true, reduction="sum", pallas_min_elems=0))
    ref_s = qfocal_loss_ref(pred, true, reduction="sum")
    assert jnp.allclose(out_s, ref_s, rtol=1e-4, atol=1e-4), (out_s, ref_s)

    # Ragged shape (not a multiple of 8*128) to exercise the 0.5-padding path.
    k3, k4 = jax.random.split(k1)
    pred2 = jax.random.normal(k3, (3, 5, 40, 52), dtype=jnp.float32)   # 31200 elems
    true2 = jax.random.uniform(k4, (3, 5, 40, 52), dtype=jnp.float32)
    out2 = jax.block_until_ready(qfocal_loss(pred2, true2, pallas_min_elems=0))
    ref2 = qfocal_loss_ref(pred2, true2)
    assert jnp.allclose(out2, ref2, rtol=1e-4, atol=1e-6), (out2, ref2)

    print("KERNEL_OK")
</pallas_src>

<mosaic_0001>
module attributes {stable_mosaic.version = 11 : i64} {
  func.func @_qfocal_kernel(%arg0: i32, %arg1: i32, %arg2: memref<32x128xf32, #tpu.memory_space<vmem>>, %arg3: memref<32x128xf32, #tpu.memory_space<vmem>>, %arg4: memref<32x128xf32, #tpu.memory_space<vmem>>) attributes {dimension_semantics = [#tpu.dimension_semantics<parallel>, #tpu.dimension_semantics<arbitrary>], iteration_bounds = array<i64: 1, 1>, scalar_prefetch = 0 : i64, scratch_operands = 0 : i64, tpu.core_type = #tpu.core_type<tc>, window_params = [{transform_indices = @transform_0, window_bounds = array<i64: 32, 128>}, {transform_indices = @transform_1, window_bounds = array<i64: 32, 128>}, {transform_indices = @transform_2, window_bounds = array<i64: 32, 128>}]} {
    %c0_i32 = arith.constant 0 : i32
    %0 = arith.cmpi eq, %arg1, %c0_i32 : i32
    %1 = arith.extui %0 : i1 to i32
    %c0_i32_0 = arith.constant 0 : i32
    %2 = arith.cmpi ne, %1, %c0_i32_0 : i32
    scf.if %2 {
      %cst_15 = arith.constant 0.000000e+00 : f32
      %36 = vector.broadcast %cst_15 : f32 to vector<32x128xf32>
      %c0_16 = arith.constant 0 : index
      %c0_17 = arith.constant 0 : index
      %37 = vector.load %arg4[%c0_16, %c0_17] : memref<32x128xf32, #tpu.memory_space<vmem>>, vector<32x128xf32>
      tpu.vector_store %arg4[%c0_16, %c0_17], %36 {strides = array<i32>} : memref<32x128xf32, #tpu.memory_space<vmem>>, vector<32x128xf32>,
    } else {
    }
    %c0 = arith.constant 0 : index
    %c0_1 = arith.constant 0 : index
    %3 = vector.load %arg2[%c0, %c0_1] : memref<32x128xf32, #tpu.memory_space<vmem>>, vector<32x128xf32>
    %c0_2 = arith.constant 0 : index
    %c0_3 = arith.constant 0 : index
    %4 = vector.load %arg3[%c0_2, %c0_3] : memref<32x128xf32, #tpu.memory_space<vmem>>, vector<32x128xf32>
    %cst = arith.constant 5.000000e-01 : f32
    %5 = vector.broadcast %cst : f32 to vector<32x128xf32>
    %6 = arith.mulf %5, %3 : vector<32x128xf32>
    %7 = math.tanh %6 : vector<32x128xf32>
    %cst_4 = arith.constant 5.000000e-01 : f32
    %8 = vector.broadcast %cst_4 : f32 to vector<32x128xf32>
    %9 = arith.mulf %8, %7 : vector<32x128xf32>
    %cst_5 = arith.constant 5.000000e-01 : f32
    %10 = vector.broadcast %cst_5 : f32 to vector<32x128xf32>
    %11 = arith.addf %9, %10 : vector<32x128xf32>
    %cst_6 = arith.constant 0.000000e+00 : f32
    %12 = vector.broadcast %cst_6 : f32 to vector<32x128xf32>
    %13 = arith.maximumf %3, %12 : vector<32x128xf32>
    %14 = arith.mulf %3, %4 : vector<32x128xf32>
    %15 = arith.subf %13, %14 : vector<32x128xf32>
    %cst_7 = arith.constant 1.000000e+00 : f32
    %16 = vector.broadcast %cst_7 : f32 to vector<32x128xf32>
    %17 = arith.subf %16, %11 : vector<32x128xf32>
    %18 = arith.maximumf %11, %17 : vector<32x128xf32>
    %19 = math.log %18 : vector<32x128xf32>
    %20 = arith.subf %15, %19 : vector<32x128xf32>
    %cst_8 = arith.constant -5.000000e-01 : f32
    %21 = vector.broadcast %cst_8 : f32 to vector<32x128xf32>
    %22 = arith.mulf %21, %4 : vector<32x128xf32>
    %cst_9 = arith.constant 7.500000e-01 : f32
    %23 = vector.broadcast %cst_9 : f32 to vector<32x128xf32>
    %24 = arith.addf %22, %23 : vector<32x128xf32>
    %25 = arith.subf %4, %11 : vector<32x128xf32>
    %26 = math.absf %25 : vector<32x128xf32>
    %27 = math.sqrt %26 : vector<32x128xf32>
    %28 = arith.mulf %26, %27 : vector<32x128xf32>
    %29 = arith.mulf %24, %28 : vector<32x128xf32>
    %30 = arith.mulf %20, %29 : vector<32x128xf32>
    %c0_10 = arith.constant 0 : index
    %c0_11 = arith.constant 0 : index
    %31 = vector.load %arg4[%c0_10, %c0_11] : memref<32x128xf32, #tpu.memory_space<vmem>>, vector<32x128xf32>
    %32 = vector.shape_cast %30 : vector<32x128xf32> to vector<1x32x128xf32>
    %cst_12 = arith.constant dense<0.000000e+00> : vector<32x128xf32>
    %33 = vector.multi_reduction <add>, %32, %cst_12 [0] : vector<1x32x128xf32> to vector<32x128xf32>
    %34 = arith.addf %31, %33 : vector<32x128xf32>
    %c0_13 = arith.constant 0 : index
    %c0_14 = arith.constant 0 : index
    %35 = vector.load %arg4[%c0_13, %c0_14] : memref<32x128xf32, #tpu.memory_space<vmem>>, vector<32x128xf32>
    tpu.vector_store %arg4[%c0_13, %c0_14], %34 {strides = array<i32>} : memref<32x128xf32, #tpu.memory_space<vmem>>, vector<32x128xf32>,
    return
  }
  func.func @transform_0(%arg0: i32, %arg1: i32) -> (i32, i32) {
    %c1_i32 = arith.constant 1 : i32
    %0 = arith.muli %arg0, %c1_i32 : i32
    %1 = arith.addi %0, %arg1 : i32
    %c0_i32 = arith.constant 0 : i32
    %c0_i32_0 = arith.constant 0 : i32
    return %1, %c0_i32 : i32, i32
  }
  func.func @transform_1(%arg0: i32, %arg1: i32) -> (i32, i32) {
    %c1_i32 = arith.constant 1 : i32
    %0 = arith.muli %arg0, %c1_i32 : i32
    %1 = arith.addi %0, %arg1 : i32
    %c0_i32 = arith.constant 0 : i32
    %c0_i32_0 = arith.constant 0 : i32
    return %1, %c0_i32 : i32, i32
  }
  func.func @transform_2(%arg0: i32, %arg1: i32) -> (i32, i32) {
    %c0_i32 = arith.constant 0 : i32
    %c0_i32_0 = arith.constant 0 : i32
    return %arg0, %c0_i32 : i32, i32
  }
}

</mosaic_0001>

<bundles_post_ra>
// kernel: tpu_custom_call.1
= control target key start
LH: loop header
LB: loop body
LE: loop exit
PB: predicated region body
PF: predicated region fallthrough
CT: control target
= control target key end

     0   :  { %7 = vsyncpa [#allocation3], 0  ;;  %s423_s0 = inlined_call_operand.hbm [shape: f32[32,128], index: 0, kind: input, shape index: {}]   ;;  %s424_s1 = inlined_call_operand.hbm [shape: f32[32,128], index: 1, kind: input, shape index: {}]   ;;  %s425_s2 = inlined_call_operand.hbm [shape: f32[32,128], index: 2, kind: output, shape index: {}]  }
   0x1   :  { %8 = vsyncpa [#allocation6], 0 }
   0x2   :  { %9 = vsyncpa [#allocation4], 0  ;;  %s308_s9 = smov [#allocation2]   ;;  %s236_s13 = scalar_lea.hbm %s423_s0, 512 }
   0x3   :  { %s19_s10 = sshll.u32 %s308_s9, 4  ;;  %p237_p0 = scmp.ne.s32.totalorder %s423_s0, %s236_s13  ;;  %s20_s10 = int_to_ptr.vmem [resolvable:$true] %s19_s10 }
   0x4   :  { %p240_p1 = scmp.lt.u32.totalorder %s236_s13, %s423_s0 }
   0x6   :  { %p242_p2 = pnand %p240_p1, %p237_p0 }
   0x8   :  { %245 = shalt.err (!%p242_p2)
}
   0x9   :  { %s246_s18 = scalar_lea.vmem %s20_s10, 512  ;;  %p251_p4 = scmp.lt.s32.totalorder %s20_s10, %s20_s10 }
   0xa   :  { %p247_p3 = scmp.ne.s32.totalorder %s20_s10, %s246_s18  ;;  %p252_p5 = scmp.lt.s32.totalorder %s246_s18, %s246_s18 }
   0xc   :  { %p253_p6 = por %p252_p5, %p251_p4 }
   0xe   :  { %p254_p7 = pnand %p253_p6, %p247_p3 }
  0x10   :  { %257 = shalt.err (!%p254_p7)
}
  0x11   :  { %s309_s19 = smov 128   ;;  %s310_s20 = smov 8  }
  0x12   :  { %25 = dma.hbm_to_vmem [thread:$0]  %s423_s0, 512, %s20_s10, [#allocation3], %s309_s19, %s309_s19, %s310_s20  }
  0x13   :  { %s311_s23 = smov [#allocation5]   ;;  %s258_s27 = scalar_lea.hbm %s424_s1, 512 }
  0x14   :  { %s35_s24 = sshll.u32 %s311_s23, 4  ;;  %p259_p8 = scmp.ne.s32.totalorder %s424_s1, %s258_s27  ;;  %s36_s24 = int_to_ptr.vmem [resolvable:$true] %s35_s24 }
  0x15   :  { %p262_p9 = scmp.lt.u32.totalorder %s258_s27, %s424_s1 }
  0x17   :  { %p264_p10 = pnand %p262_p9, %p259_p8 }
  0x19   :  { %267 = shalt.err (!%p264_p10)
}
  0x1a   :  { %s268_s4 = scalar_lea.vmem %s36_s24, 512  ;;  %p273_p12 = scmp.lt.s32.totalorder %s36_s24, %s36_s24 }
  0x1b   :  { %p269_p11 = scmp.ne.s32.totalorder %s36_s24, %s268_s4  ;;  %p274_p13 = scmp.lt.s32.totalorder %s268_s4, %s268_s4 }
  0x1d   :  { %p275_p0 = por %p274_p13, %p273_p12 }
  0x1f   :  { %p276_p1 = pnand %p275_p0, %p269_p11 }
  0x21   :  { %279 = shalt.err (!%p276_p1)
}
  0x22   :  { %41 = dma.hbm_to_vmem [thread:$0]  %s424_s1, 512, %s36_s24, [#allocation6], %s309_s19, %s309_s19, %s310_s20  }
  0x23   :  { %302 = dma.done.wait [#allocation3], 512  }
  0x24   :  { %303 = vsyncadd [#allocation3], 4294966784 }
  0x25   :  { %304 = dma.done.wait [#allocation6], 512  }
  0x26   :  { %305 = vsyncadd [#allocation6], 4294966784  ;;  %v60_v0 = vld [vmem:[#allocation2] sm:$0xff]  ;;  %v358_v1 = vld [vmem:[#allocation2 + $0x8] sm:$0xff]  ;;  %s312_s1 = smov [#allocation7]  }
  0x27   :  { %v68_v2 = vmul.f32 0.5, %v60_v0  ;;  %v360_v3 = vld [vmem:[#allocation2 + $0x10] sm:$0xff]  ;;  %v69_v4 = vmul.f32 0.5, %v358_v1  ;;  %v363_v5 = vld [vmem:[#allocation2 + $0x18] sm:$0xff]  ;;  %v64_v12 = vld [vmem:[#allocation5] sm:$0xff]  ;;  %v84_v38 = vmax.f32 %v60_v0, 0.0 }
  0x28   :  { %v70_v6 = vmul.f32 0.5, %v360_v3  ;;  %v71_v7 = vmul.f32 0.5, %v363_v5  ;;  %v65_v15 = vld [vmem:[#allocation5 + $0x8] sm:$0xff]  ;;  %v66_v19 = vld [vmem:[#allocation5 + $0x10] sm:$0xff]  ;;  %v67_v33 = vld [vmem:[#allocation5 + $0x18] sm:$0xff]  ;;  %v88_v39 = vmul.f32 %v64_v12, %v60_v0  ;;  %v116_v42 = vmul.f32 -0.5, %v64_v12 }
  0x29   :  { %212 = vtanh.f32 %v68_v2  ;;  %v85_v43 = vmax.f32 %v358_v1, 0.0  ;;  %v89_v44 = vmul.f32 %v65_v15, %v358_v1  ;;  %v117_v45 = vmul.f32 -0.5, %v65_v15  ;;  %s193_s6 = sshll.u32 %s312_s1, 4  ;;  %s194_s6 = int_to_ptr.vmem [resolvable:$true] %s193_s6 }
  0x2a   :  { %214 = vtanh.f32 %v69_v4  ;;  %v86_v46 = vmax.f32 %v360_v3, 0.0  ;;  %v90_v47 = vmul.f32 %v66_v19, %v360_v3  ;;  %v92_v48 = vsub.f32 %v84_v38, %v88_v39  ;;  %s280_s7 = scalar_lea.vmem %s194_s6, 512  ;;  %p285_p3 = scmp.lt.s32.totalorder %s194_s6, %s194_s6 }
  0x2b   :  { %216 = vtanh.f32 %v70_v6  ;;  %v118_v49 = vmul.f32 -0.5, %v66_v19  ;;  %v120_v51 = vadd.f32 0.75, %v116_v42  ;;  %v93_v52 = vsub.f32 %v85_v43, %v89_v44  ;;  %p281_p2 = scmp.ne.s32.totalorder %s194_s6, %s280_s7  ;;  %p286_p4 = scmp.lt.s32.totalorder %s280_s7, %s280_s7 }
  0x2c   :  { %218 = vtanh.f32 %v71_v7  ;;  %v121_v53 = vadd.f32 0.75, %v117_v45  ;;  %v87_v54 = vmax.f32 %v363_v5, 0.0  ;;  %v91_v58 = vmul.f32 %v67_v33, %v363_v5 }
  0x2d   :  { %v94_v61 = vsub.f32 %v86_v46, %v90_v47  ;;  %v119_v62 = vmul.f32 -0.5, %v67_v33  ;;  %v122_v1 = vadd.f32 0.75, %v118_v49  ;;  %p287_p5 = por %p286_p4, %p285_p3 }
  0x2f   :  { %p288_p6 = pnand %p287_p5, %p281_p2 }
  0x33   :  { %v213_v8 = vpop.eup %212 }
  0x34   :  { %v215_v9 = vpop.eup %214  ;;  %v76_v10 = vmul.f32 0.5, %v213_v8 }
  0x35   :  { %v217_v11 = vpop.eup %216  ;;  %v77_v13 = vmul.f32 0.5, %v215_v9 }
  0x36   :  { %v80_v14 = vadd.f32 0.5, %v76_v10  ;;  %v78_v16 = vmul.f32 0.5, %v217_v11  ;;  %v219_v17 = vpop.eup %218 }
  0x37   :  { %v81_v18 = vadd.f32 0.5, %v77_v13  ;;  %v79_v23 = vmul.f32 0.5, %v219_v17 }
  0x38   :  { %v96_v20 = vsub.f32 1.0, %v80_v14  ;;  %v124_v21 = vsub.f32 %v64_v12, %v80_v14  ;;  %v82_v22 = vadd.f32 0.5, %v78_v16  ;;  %v95_v16 = vsub.f32 %v87_v54, %v91_v58 }
  0x39   :  { %v97_v24 = vsub.f32 1.0, %v81_v18  ;;  %v125_v25 = vsub.f32 %v65_v15, %v81_v18  ;;  %v83_v32 = vadd.f32 0.5, %v79_v23 }
  0x3a   :  { %v100_v26 = vmax.f32 %v80_v14, %v96_v20  ;;  %v128_v27 = vand.u32 2147483647, %v124_v21  ;;  %v98_v28 = vsub.f32 1.0, %v82_v22  ;;  %v126_v29 = vsub.f32 %v66_v19, %v82_v22 }
  0x3b   :  { %v101_v30 = vmax.f32 %v81_v18, %v97_v24  ;;  %v367_v31 = vand.u32 2147483647, %v125_v25  ;;  %v99_v36 = vsub.f32 1.0, %v83_v32  ;;  %v127_v37 = vsub.f32 %v67_v33, %v83_v32 }
  0x3c   :  { %220 = vlog2.f32 %v100_v26  ;;  %v102_v34 = vmax.f32 %v82_v22, %v98_v28  ;;  %v369_v35 = vand.u32 2147483647, %v126_v29  ;;  %vm134_vm0 = vcmp.eq.f32.partialorder %v128_v27, inf }
  0x3d   :  { %222 = vrsqrt.f32 %v128_v27  ;;  %v103_v40 = vmax.f32 %v83_v32, %v99_v36  ;;  %v373_v41 = vand.u32 2147483647, %v127_v37  ;;  %v137_v57 = vand.u32 2147483648, %v128_v27 }
  0x3e   :  { %224 = vlog2.f32 %v101_v30  ;;  %vm136_vm1 = vcmp.eq.f32.partialorder %v128_v27, 0.0  ;;  %vm141_vm2 = vcmp.eq.f32.partialorder %v367_v31, inf  ;;  %vm143_vm3 = vcmp.eq.f32.partialorder %v367_v31, 0.0 }
  0x3f   :  { %226 = vrsqrt.f32 %v367_v31  ;;  %v144_v0 = vand.u32 2147483648, %v367_v31  ;;  %vm148_vm4 = vcmp.eq.f32.partialorder %v369_v35, inf  ;;  %vm150_vm5 = vcmp.eq.f32.partialorder %v369_v35, 0.0 }
  0x40   :  { %228 = vlog2.f32 %v102_v34  ;;  %v151_v9 = vand.u32 2147483648, %v369_v35  ;;  %vm155_vm6 = vcmp.eq.f32.partialorder %v373_v41, inf  ;;  %v158_v17 = vand.u32 2147483648, %v373_v41 }
  0x41   :  { %230 = vrsqrt.f32 %v369_v35  ;;  %vm157_vm7 = vcmp.eq.f32.partialorder %v373_v41, 0.0  ;;  %v123_v30 = vadd.f32 0.75, %v119_v62 }
  0x42   :  { %232 = vlog2.f32 %v103_v40 }
  0x43   :  { %234 = vrsqrt.f32 %v373_v41 }
  0x46   :  { %v221_v50 = vpop.eup %220 }
  0x47   :  { %v223_v55 = vpop.eup %222  ;;  %v105_v56 = vmul.f32 0.6931472, %v221_v50 }
  0x48   :  { %v225_v59 = vpop.eup %224  ;;  %v133_v60 = vmul.f32 %v223_v55, %v128_v27 }
  0x49   :  { %v227_v63 = vpop.eup %226  ;;  %v107_v4 = vmul.f32 0.6931472, %v225_v59  ;;  %v112_v7 = vsub.f32 %v92_v48, %v105_v56 }
  0x4a   :  { %v229_v2 = vpop.eup %228  ;;  %v135_v3 = vsel %vm134_vm0, %v128_v27, %v133_v60  ;;  %v140_v6 = vmul.f32 %v227_v63, %v367_v31 }
  0x4b   :  { %v231_v5 = vpop.eup %230  ;;  %v138_v8 = vsel %vm136_vm1, %v137_v57, %v135_v3  ;;  %v109_v12 = vmul.f32 0.6931472, %v229_v2  ;;  %v113_v20 = vsub.f32 %v93_v52, %v107_v4 }
  0x4c   :  { %v160_v10 = vmul.f32 %v138_v8, %v128_v27  ;;  %v142_v11 = vsel %vm141_vm2, %v367_v31, %v140_v6  ;;  %v147_v13 = vmul.f32 %v231_v5, %v369_v35  ;;  %v233_v14 = vpop.eup %232 }
  0x4d   :  { %v145_v15 = vsel %vm143_vm3, %v144_v0, %v142_v11  ;;  %v235_v18 = vpop.eup %234  ;;  %v111_v24 = vmul.f32 0.6931472, %v233_v14  ;;  %v114_v28 = vsub.f32 %v94_v61, %v109_v12 }
  0x4e   :  { %v164_v19 = vmul.f32 %v160_v10, %v120_v51  ;;  %v161_v21 = vmul.f32 %v145_v15, %v367_v31  ;;  %v149_v22 = vsel %vm148_vm4, %v369_v35, %v147_v13  ;;  %v154_v25 = vmul.f32 %v235_v18, %v373_v41 }
  0x4f   :  { %v152_v23 = vsel %vm150_vm5, %v151_v9, %v149_v22  ;;  %v115_v36 = vsub.f32 %v95_v16, %v111_v24 }
  0x50   :  { %v168_v26 = vmul.f32 %v164_v19, %v112_v7  ;;  %v165_v27 = vmul.f32 %v161_v21, %v121_v53  ;;  %v162_v29 = vmul.f32 %v152_v23, %v369_v35  ;;  %v156_v31 = vsel %vm155_vm6, %v373_v41, %v154_v25 }
  0x51   :  { %v159_v34 = vsel %vm157_vm7, %v158_v17, %v156_v31 }
  0x52   :  { %v169_v32 = vmul.f32 %v165_v27, %v113_v20  ;;  %v166_v33 = vmul.f32 %v162_v29, %v122_v1  ;;  %v163_v37 = vmul.f32 %v159_v34, %v373_v41  ;;  %184 = vst [vmem:[#allocation7] sm:$0xff] %v168_v26 }
  0x54   :  { %v170_v38 = vmul.f32 %v166_v33, %v114_v28  ;;  %v167_v39 = vmul.f32 %v163_v37, %v123_v30  ;;  %185 = vst [vmem:[#allocation7 + $0x8] sm:$0xff] %v169_v32 }
  0x56   :  { %v171_v40 = vmul.f32 %v167_v39, %v115_v36  ;;  %186 = vst [vmem:[#allocation7 + $0x10] sm:$0xff] %v170_v38 }
  0x58   :  { %187 = vst [vmem:[#allocation7 + $0x18] sm:$0xff] %v171_v40 }
  0x59   :  { %291 = shalt.err (!%p288_p6)
}
  0x5a   :  { %s292_s10 = scalar_lea.hbm %s425_s2, 512 }
  0x5b   :  { %p293_p7 = scmp.ne.s32.totalorder %s425_s2, %s292_s10  ;;  %p296_p8 = scmp.lt.u32.totalorder %s292_s10, %s425_s2 }
  0x5d   :  { %p298_p9 = pnand %p296_p8, %p293_p7 }
  0x5f   :  { %301 = shalt.err (!%p298_p9)
}
  0x60   :  { %199 = dma.vmem_to_hbm [thread:$0]  %s194_s6, 512, %s425_s2, [#allocation4], %s309_s19, %s309_s19, %s310_s20  }
  0x61   :  { %306 = dma.done.wait [#allocation4], 512  }
  0x62   :  { %307 = vsyncadd [#allocation4], 4294966784 }
  0x63   :  { %203 = vsyncpa [#allocation3], 1 }
  0x64   :  { %204 = vsyncpa [#allocation6], 1 }
  0x65   :  { %205 = vsyncpa [#allocation4], 1 }

</bundles_post_ra>
